<compile_context>
chip_gen: v7x
topology: tpu7x:2x2x1
jax: 0.10.0
libtpu: 0.0.40
codegen_flags: <defaults>
</compile_context>

<pallas_src>
import functools

import jax
import jax.numpy as jnp
import numpy as np
from jax import lax
from jax.experimental import pallas as pl
from jax.experimental.pallas import tpu as pltpu


def _pick_tile(total: int, preferred) -> int:
    """Largest preferred tile that evenly divides `total`, else the full dim."""
    for t in preferred:
        if t <= total and total % t == 0:
            return t
    return total  # whole-dim block (allowed: equals the full array dim)


def coral_kernel(ms_i_ref, mt_i_ref, ms_j_ref, mt_j_ref,
                 fs_i_ref, ft_i_ref, fs_j_ref, ft_j_ref,
                 out_ref, acc_ref, *, n_total: int, d_total: int):
    nk = pl.program_id(1)
    dj = pl.program_id(2)
    nkt = pl.num_programs(1)

    # Per-di output partial: zero it once, at the very first step for this di.
    @pl.when(jnp.logical_and(nk == 0, dj == 0))
    def _():
        out_ref[...] = jnp.zeros_like(out_ref)

    # Per-dj covariance-difference accumulator: reset at the first batch tile.
    @pl.when(nk == 0)
    def _():
        acc_ref[dj] = jnp.zeros(acc_ref.shape[1:], acc_ref.dtype)

    # Center the feature tiles in their native dtype (means were pre-cast by
    # the wrapper), then contract over the batch axis (dim 0 of both operands
    # -> transposed-LHS MXU feed, no explicit transpose) with f32 accumulation.
    cs_i = fs_i_ref[...] - ms_i_ref[...]
    ct_i = ft_i_ref[...] - mt_i_ref[...]
    cs_j = fs_j_ref[...] - ms_j_ref[...]
    ct_j = ft_j_ref[...] - mt_j_ref[...]

    dn = (((0,), (0,)), ((), ()))
    acc_ref[dj] += (
        lax.dot_general(cs_i, cs_j, dn, preferred_element_type=jnp.float32)
        - lax.dot_general(ct_i, ct_j, dn, preferred_element_type=jnp.float32))

    # Finalize this (di, dj) covariance-difference tile at the last batch tile.
    @pl.when(nk == nkt - 1)
    def _():
        inv_nm1 = 1.0 / (n_total - 1)
        # acc = (cov_s - cov_t) * (n - 1)  for this (di, dj) block.
        diff = acc_ref[dj]
        cov_scale = (inv_nm1 * inv_nm1) / float(d_total * d_total)
        cov_contrib = jnp.sum(diff * diff) * cov_scale

        # Mean-difference term uses only the di-tile column means; add it
        # exactly once per di (at the first dj tile).
        md = ms_i_ref[...].astype(jnp.float32) - mt_i_ref[...].astype(jnp.float32)
        mean_contrib = jnp.where(
            dj == 0, jnp.sum(md * md) * (1.0 / float(d_total)), 0.0)

        # Broadcast-add the scalar partial into the whole (1, 8, 128) block
        # (avoids a masked single-lane store); wrapper reads [di, 0, 0].
        out_ref[...] = out_ref[...] + (cov_contrib + mean_contrib)


def coral_loss(f_s: jax.Array, f_t: jax.Array) -> jax.Array:
    assert f_s.shape == f_t.shape and f_s.ndim == 2
    n, d = f_s.shape
    assert n >= 2, "CORAL covariance divides by (n - 1); need n >= 2."

    # Column means: one cheap f32 reduction in XLA, cast back to the input
    # dtype so the MXU sees native-precision centered operands.
    mean_s = jnp.mean(f_s.astype(jnp.float32), axis=0, keepdims=True).astype(f_s.dtype)
    mean_t = jnp.mean(f_t.astype(jnp.float32), axis=0, keepdims=True).astype(f_t.dtype)

    # MXU / lane aligned covariance tiles; keep the f32 row-panel scratch
    # (d * td * 4 bytes) comfortably inside VMEM even on v7x.
    td = _pick_tile(d, (256, 128))
    if td == 256 and d % 128 == 0 and d * td * 4 > (16 << 20):
        td = 128
    tn = _pick_tile(n, (512, 256, 128, 64, 32, 16, 8))
    nd = d // td
    nkt = n // tn

    # Explicit VMEM budget: double-buffered input tiles + row panel + output.
    itemsize = jnp.dtype(f_s.dtype).itemsize
    est_bytes = (4 * 2 * tn * td * itemsize     # pipelined feature tiles
                 + 4 * 2 * td * itemsize        # pipelined mean tiles
                 + nd * td * td * 4             # covariance-diff row panel
                 + 2 * 8 * 128 * 4)             # output partial block
    vmem_limit = int(min(96 << 20,
                         max(est_bytes + (est_bytes >> 1) + (4 << 20), 32 << 20)))

    mean_i_spec = pl.BlockSpec((1, td), lambda di, nk, dj: (0, di))
    mean_j_spec = pl.BlockSpec((1, td), lambda di, nk, dj: (0, dj))
    feat_i_spec = pl.BlockSpec((tn, td), lambda di, nk, dj: (nk, di))
    feat_j_spec = pl.BlockSpec((tn, td), lambda di, nk, dj: (nk, dj))
    out_spec = pl.BlockSpec((1, 8, 128), lambda di, nk, dj: (di, 0, 0))

    kernel = functools.partial(coral_kernel, n_total=n, d_total=d)

    partials = pl.pallas_call(
        kernel,
        out_shape=jax.ShapeDtypeStruct((nd, 8, 128), jnp.float32),
        grid_spec=pltpu.PrefetchScalarGridSpec(
            num_scalar_prefetch=0,
            grid=(nd, nkt, nd),
            in_specs=[mean_i_spec, mean_i_spec, mean_j_spec, mean_j_spec,
                      feat_i_spec, feat_i_spec, feat_j_spec, feat_j_spec],
            out_specs=out_spec,
            scratch_shapes=[
                pltpu.VMEM((nd, td, td), jnp.float32),   # cov-diff row panel
            ]),
        compiler_params=pltpu.CompilerParams(
            dimension_semantics=("parallel", "arbitrary", "arbitrary"),
            vmem_limit_bytes=vmem_limit),
    )(mean_s, mean_t, mean_s, mean_t, f_s, f_t, f_s, f_t)

    # One scalar partial per di row-tile of the covariance; sum them.
    return jnp.sum(partials[:, 0, 0])


def coral_loss_ref(f_s, f_t):
    """Pure-JAX reference mirroring the PyTorch forward exactly."""
    n = f_s.shape[0]
    mean_s = jnp.mean(f_s, axis=0, keepdims=True)
    mean_t = jnp.mean(f_t, axis=0, keepdims=True)
    cent_s = f_s - mean_s
    cent_t = f_t - mean_t
    cov_s = cent_s.T @ cent_s / (n - 1)
    cov_t = cent_t.T @ cent_t / (n - 1)
    mean_diff = jnp.mean((mean_s - mean_t) ** 2)
    cov_diff = jnp.mean((cov_s - cov_t) ** 2)
    return mean_diff + cov_diff


if __name__ == "__main__":
    key = jax.random.PRNGKey(0)

    # Primary small case consistent with the module: mini-batch N=8, d=32.
    k_s, k_t = jax.random.split(key)
    f_s = jax.random.normal(k_s, (8, 32), dtype=jnp.float32)
    f_t = jax.random.normal(k_t, (8, 32), dtype=jnp.float32) * 1.5 + 0.3

    loss = coral_loss(f_s, f_t)
    jax.block_until_ready(loss)
    ref = coral_loss_ref(f_s, f_t)
    np.testing.assert_allclose(np.asarray(loss), np.asarray(ref),
                               rtol=1e-4, atol=1e-5)

    # Extra case exercising the tiled path (nd = 3 covariance tiles per axis,
    # nkt = 3 batch tiles) — still small.
    k1, k2 = jax.random.split(jax.random.PRNGKey(1))
    g_s = jax.random.normal(k1, (48, 384), dtype=jnp.float32)
    g_t = jax.random.normal(k2, (48, 384), dtype=jnp.float32) * 0.7 - 0.2

    loss2 = coral_loss(g_s, g_t)
    jax.block_until_ready(loss2)
    ref2 = coral_loss_ref(g_s, g_t)
    np.testing.assert_allclose(np.asarray(loss2), np.asarray(ref2),
                               rtol=1e-4, atol=1e-5)

    print("KERNEL_OK")
</pallas_src>

<mosaic_0001>
module attributes {stable_mosaic.version = 11 : i64} {
  func.func @coral_kernel(%arg0: i32, %arg1: i32, %arg2: i32, %arg3: memref<1x32xf32, #tpu.memory_space<vmem>>, %arg4: memref<1x32xf32, #tpu.memory_space<vmem>>, %arg5: memref<1x32xf32, #tpu.memory_space<vmem>>, %arg6: memref<1x32xf32, #tpu.memory_space<vmem>>, %arg7: memref<8x32xf32, #tpu.memory_space<vmem>>, %arg8: memref<8x32xf32, #tpu.memory_space<vmem>>, %arg9: memref<8x32xf32, #tpu.memory_space<vmem>>, %arg10: memref<8x32xf32, #tpu.memory_space<vmem>>, %arg11: memref<1x8x128xf32, #tpu.memory_space<vmem>>, %arg12: memref<1x32x32xf32, #tpu.memory_space<vmem>>) attributes {dimension_semantics = [#tpu.dimension_semantics<parallel>, #tpu.dimension_semantics<arbitrary>, #tpu.dimension_semantics<arbitrary>], iteration_bounds = array<i64: 1, 1, 1>, scalar_prefetch = 0 : i64, scratch_operands = 1 : i64, tpu.core_type = #tpu.core_type<tc>, window_params = [{transform_indices = @transform_0, window_bounds = array<i64: 1, 32>}, {transform_indices = @transform_1, window_bounds = array<i64: 1, 32>}, {transform_indices = @transform_2, window_bounds = array<i64: 1, 32>}, {transform_indices = @transform_3, window_bounds = array<i64: 1, 32>}, {transform_indices = @transform_4, window_bounds = array<i64: 8, 32>}, {transform_indices = @transform_5, window_bounds = array<i64: 8, 32>}, {transform_indices = @transform_6, window_bounds = array<i64: 8, 32>}, {transform_indices = @transform_7, window_bounds = array<i64: 8, 32>}, {transform_indices = @transform_8, window_bounds = array<i64: 1, 8, 128>}]} {
    %c0_i32 = arith.constant 0 : i32
    %0 = arith.cmpi eq, %arg1, %c0_i32 : i32
    %c0_i32_0 = arith.constant 0 : i32
    %1 = arith.cmpi eq, %arg2, %c0_i32_0 : i32
    %2 = arith.andi %0, %1 : i1
    %3 = arith.extui %2 : i1 to i32
    %c0_i32_1 = arith.constant 0 : i32
    %4 = arith.cmpi ne, %3, %c0_i32_1 : i32
    scf.if %4 {
      %cst_26 = arith.constant 0.000000e+00 : f32
      %38 = vector.broadcast %cst_26 : f32 to vector<1x8x128xf32>
      %c0_27 = arith.constant 0 : index
      %c0_28 = arith.constant 0 : index
      %c0_29 = arith.constant 0 : index
      %39 = vector.load %arg11[%c0_27, %c0_28, %c0_29] : memref<1x8x128xf32, #tpu.memory_space<vmem>>, vector<1x8x128xf32>
      tpu.vector_store %arg11[%c0_27, %c0_28, %c0_29], %38 {strides = array<i32>} : memref<1x8x128xf32, #tpu.memory_space<vmem>>, vector<1x8x128xf32>,
    } else {
    }
    %c0_i32_2 = arith.constant 0 : i32
    %5 = arith.cmpi eq, %arg1, %c0_i32_2 : i32
    %6 = arith.extui %5 : i1 to i32
    %c0_i32_3 = arith.constant 0 : i32
    %7 = arith.cmpi ne, %6, %c0_i32_3 : i32
    scf.if %7 {
      %cst_26 = arith.constant 0.000000e+00 : f32
      %38 = vector.broadcast %cst_26 : f32 to vector<32x32xf32>
      %39 = arith.index_cast %arg2 : i32 to index
      %c0_27 = arith.constant 0 : index
      %c0_28 = arith.constant 0 : index
      %40 = vector.load %arg12[%39, %c0_27, %c0_28] : memref<1x32x32xf32, #tpu.memory_space<vmem>>, vector<1x32x32xf32>
      %41 = vector.shape_cast %40 : vector<1x32x32xf32> to vector<32x32xf32>
      %42 = vector.shape_cast %38 : vector<32x32xf32> to vector<1x32x32xf32>
      tpu.vector_store %arg12[%39, %c0_27, %c0_28], %42 {strides = array<i32>} : memref<1x32x32xf32, #tpu.memory_space<vmem>>, vector<1x32x32xf32>,
    } else {
    }
    %c0 = arith.constant 0 : index
    %c0_4 = arith.constant 0 : index
    %8 = vector.load %arg7[%c0, %c0_4] : memref<8x32xf32, #tpu.memory_space<vmem>>, vector<8x32xf32>
    %c0_5 = arith.constant 0 : index
    %c0_6 = arith.constant 0 : index
    %9 = vector.load %arg3[%c0_5, %c0_6] : memref<1x32xf32, #tpu.memory_space<vmem>>, vector<1x32xf32>
    %10 = vector.broadcast %9 : vector<1x32xf32> to vector<8x32xf32>
    %11 = arith.subf %8, %10 : vector<8x32xf32>
    %c0_7 = arith.constant 0 : index
    %c0_8 = arith.constant 0 : index
    %12 = vector.load %arg8[%c0_7, %c0_8] : memref<8x32xf32, #tpu.memory_space<vmem>>, vector<8x32xf32>
    %c0_9 = arith.constant 0 : index
    %c0_10 = arith.constant 0 : index
    %13 = vector.load %arg4[%c0_9, %c0_10] : memref<1x32xf32, #tpu.memory_space<vmem>>, vector<1x32xf32>
    %14 = vector.broadcast %13 : vector<1x32xf32> to vector<8x32xf32>
    %15 = arith.subf %12, %14 : vector<8x32xf32>
    %c0_11 = arith.constant 0 : index
    %c0_12 = arith.constant 0 : index
    %16 = vector.load %arg9[%c0_11, %c0_12] : memref<8x32xf32, #tpu.memory_space<vmem>>, vector<8x32xf32>
    %c0_13 = arith.constant 0 : index
    %c0_14 = arith.constant 0 : index
    %17 = vector.load %arg5[%c0_13, %c0_14] : memref<1x32xf32, #tpu.memory_space<vmem>>, vector<1x32xf32>
    %18 = vector.broadcast %17 : vector<1x32xf32> to vector<8x32xf32>
    %19 = arith.subf %16, %18 : vector<8x32xf32>
    %c0_15 = arith.constant 0 : index
    %c0_16 = arith.constant 0 : index
    %20 = vector.load %arg10[%c0_15, %c0_16] : memref<8x32xf32, #tpu.memory_space<vmem>>, vector<8x32xf32>
    %c0_17 = arith.constant 0 : index
    %c0_18 = arith.constant 0 : index
    %21 = vector.load %arg6[%c0_17, %c0_18] : memref<1x32xf32, #tpu.memory_space<vmem>>, vector<1x32xf32>
    %22 = vector.broadcast %21 : vector<1x32xf32> to vector<8x32xf32>
    %23 = arith.subf %20, %22 : vector<8x32xf32>
    %24 = arith.index_cast %arg2 : i32 to index
    %c0_19 = arith.constant 0 : index
    %c0_20 = arith.constant 0 : index
    %25 = vector.load %arg12[%24, %c0_19, %c0_20] : memref<1x32x32xf32, #tpu.memory_space<vmem>>, vector<1x32x32xf32>
    %26 = vector.shape_cast %25 : vector<1x32x32xf32> to vector<32x32xf32>
    %cst = arith.constant dense<0.000000e+00> : vector<32x32xf32>
    %27 = tpu.matmul %11, %19, %cst {dimension_numbers = #tpu.dot_dimension_numbers<[0], [0], [1], [1], [0, 1, 1, 1], [], []>} : vector<8x32xf32>, vector<8x32xf32>, vector<32x32xf32> -> vector<32x32xf32>
    %cst_21 = arith.constant dense<0.000000e+00> : vector<32x32xf32>
    %28 = tpu.matmul %15, %23, %cst_21 {dimension_numbers = #tpu.dot_dimension_numbers<[0], [0], [1], [1], [0, 1, 1, 1], [], []>} : vector<8x32xf32>, vector<8x32xf32>, vector<32x32xf32> -> vector<32x32xf32>
    %29 = arith.subf %27, %28 : vector<32x32xf32>
    %30 = arith.addf %26, %29 : vector<32x32xf32>
    %31 = arith.index_cast %arg2 : i32 to index
    %c0_22 = arith.constant 0 : index
    %c0_23 = arith.constant 0 : index
    %32 = vector.load %arg12[%31, %c0_22, %c0_23] : memref<1x32x32xf32, #tpu.memory_space<vmem>>, vector<1x32x32xf32>
    %33 = vector.shape_cast %32 : vector<1x32x32xf32> to vector<32x32xf32>
    %34 = vector.shape_cast %30 : vector<32x32xf32> to vector<1x32x32xf32>
    tpu.vector_store %arg12[%31, %c0_22, %c0_23], %34 {strides = array<i32>} : memref<1x32x32xf32, #tpu.memory_space<vmem>>, vector<1x32x32xf32>,
    %c0_i32_24 = arith.constant 0 : i32
    %35 = arith.cmpi eq, %arg1, %c0_i32_24 : i32
    %36 = arith.extui %35 : i1 to i32
    %c0_i32_25 = arith.constant 0 : i32
    %37 = arith.cmpi ne, %36, %c0_i32_25 : i32
    scf.if %37 {
      %38 = arith.index_cast %arg2 : i32 to index
      %c0_26 = arith.constant 0 : index
      %c0_27 = arith.constant 0 : index
      %39 = vector.load %arg12[%38, %c0_26, %c0_27] : memref<1x32x32xf32, #tpu.memory_space<vmem>>, vector<1x32x32xf32>
      %40 = vector.shape_cast %39 : vector<1x32x32xf32> to vector<32x32xf32>
      %41 = arith.mulf %40, %40 : vector<32x32xf32>
      %42 = vector.shape_cast %41 : vector<32x32xf32> to vector<1x32x32xf32>
      %cst_28 = arith.constant dense<0.000000e+00> : vector<1xf32>
      %43 = vector.multi_reduction <add>, %42, %cst_28 [1, 2] : vector<1x32x32xf32> to vector<1xf32>
      %44 = vector.shape_cast %43 : vector<1xf32> to vector<1x1x1xf32>
      %45 = vector.extract %44[0, 0, 0] : f32 from vector<1x1x1xf32>
      %cst_29 = arith.constant 1.99298465E-5 : f32
      %46 = arith.mulf %45, %cst_29 : f32
      %c0_30 = arith.constant 0 : index
      %c0_31 = arith.constant 0 : index
      %47 = vector.load %arg3[%c0_30, %c0_31] : memref<1x32xf32, #tpu.memory_space<vmem>>, vector<1x32xf32>
      %c0_32 = arith.constant 0 : index
      %c0_33 = arith.constant 0 : index
      %48 = vector.load %arg4[%c0_32, %c0_33] : memref<1x32xf32, #tpu.memory_space<vmem>>, vector<1x32xf32>
      %49 = arith.subf %47, %48 : vector<1x32xf32>
      %c0_i32_34 = arith.constant 0 : i32
      %50 = arith.cmpi eq, %arg2, %c0_i32_34 : i32
      %51 = arith.mulf %49, %49 : vector<1x32xf32>
      %52 = vector.shape_cast %51 : vector<1x32xf32> to vector<1x1x32xf32>
      %cst_35 = arith.constant dense<0.000000e+00> : vector<1xf32>
      %53 = vector.multi_reduction <add>, %52, %cst_35 [1, 2] : vector<1x1x32xf32> to vector<1xf32>
      %54 = vector.shape_cast %53 : vector<1xf32> to vector<1x1x1xf32>
      %55 = vector.extract %54[0, 0, 0] : f32 from vector<1x1x1xf32>
      %cst_36 = arith.constant 3.125000e-02 : f32
      %56 = arith.mulf %55, %cst_36 : f32
      %cst_37 = arith.constant 0.000000e+00 : f32
      %57 = arith.select %50, %56, %cst_37 : f32
      %c0_38 = arith.constant 0 : index
      %c0_39 = arith.constant 0 : index
      %c0_40 = arith.constant 0 : index
      %58 = vector.load %arg11[%c0_38, %c0_39, %c0_40] : memref<1x8x128xf32, #tpu.memory_space<vmem>>, vector<1x8x128xf32>
      %59 = arith.addf %46, %57 : f32
      %60 = vector.broadcast %59 : f32 to vector<1x8x128xf32>
      %61 = arith.addf %58, %60 : vector<1x8x128xf32>
      %c0_41 = arith.constant 0 : index
      %c0_42 = arith.constant 0 : index
      %c0_43 = arith.constant 0 : index
      %62 = vector.load %arg11[%c0_41, %c0_42, %c0_43] : memref<1x8x128xf32, #tpu.memory_space<vmem>>, vector<1x8x128xf32>
      tpu.vector_store %arg11[%c0_41, %c0_42, %c0_43], %61 {strides = array<i32>} : memref<1x8x128xf32, #tpu.memory_space<vmem>>, vector<1x8x128xf32>,
    } else {
    }
    return
  }
  func.func @transform_0(%arg0: i32, %arg1: i32, %arg2: i32) -> (i32, i32) {
    %c0_i32 = arith.constant 0 : i32
    %c0_i32_0 = arith.constant 0 : i32
    return %c0_i32, %arg0 : i32, i32
  }
  func.func @transform_1(%arg0: i32, %arg1: i32, %arg2: i32) -> (i32, i32) {
    %c0_i32 = arith.constant 0 : i32
    %c0_i32_0 = arith.constant 0 : i32
    return %c0_i32, %arg0 : i32, i32
  }
  func.func @transform_2(%arg0: i32, %arg1: i32, %arg2: i32) -> (i32, i32) {
    %c0_i32 = arith.constant 0 : i32
    %c0_i32_0 = arith.constant 0 : i32
    return %c0_i32, %arg2 : i32, i32
  }
  func.func @transform_3(%arg0: i32, %arg1: i32, %arg2: i32) -> (i32, i32) {
    %c0_i32 = arith.constant 0 : i32
    %c0_i32_0 = arith.constant 0 : i32
    return %c0_i32, %arg2 : i32, i32
  }
  func.func @transform_4(%arg0: i32, %arg1: i32, %arg2: i32) -> (i32, i32) {
    %c0_i32 = arith.constant 0 : i32
    return %arg1, %arg0 : i32, i32
  }
  func.func @transform_5(%arg0: i32, %arg1: i32, %arg2: i32) -> (i32, i32) {
    %c0_i32 = arith.constant 0 : i32
    return %arg1, %arg0 : i32, i32
  }
  func.func @transform_6(%arg0: i32, %arg1: i32, %arg2: i32) -> (i32, i32) {
    %c0_i32 = arith.constant 0 : i32
    return %arg1, %arg2 : i32, i32
  }
  func.func @transform_7(%arg0: i32, %arg1: i32, %arg2: i32) -> (i32, i32) {
    %c0_i32 = arith.constant 0 : i32
    return %arg1, %arg2 : i32, i32
  }
  func.func @transform_8(%arg0: i32, %arg1: i32, %arg2: i32) -> (i32, i32, i32) {
    %c0_i32 = arith.constant 0 : i32
    %c0_i32_0 = arith.constant 0 : i32
    %c0_i32_1 = arith.constant 0 : i32
    return %arg0, %c0_i32, %c0_i32_0 : i32, i32, i32
  }
}

</mosaic_0001>

<bundles_post_ra>
// kernel: tpu_custom_call.1
= control target key start
LH: loop header
LB: loop body
LE: loop exit
PB: predicated region body
PF: predicated region fallthrough
CT: control target
= control target key end

     0   :  { %13 = vsyncpa [#allocation4], 0  ;;  %s739_s0 = inlined_call_operand.hbm [shape: f32[1,32], index: 0, kind: input, shape index: {}]   ;;  %s740_s1 = inlined_call_operand.vmem [shape: f32[1,32], index: 1, kind: input, shape index: {}]   ;;  %s741_s2 = inlined_call_operand.vmem [shape: f32[1,32], index: 2, kind: input, shape index: {}]   ;;  %s742_s3 = inlined_call_operand.hbm [shape: f32[1,32], index: 3, kind: input, shape index: {}]   ;;  %s743_s4 = inlined_call_operand.vmem [shape: f32[8,32], index: 4, kind: input, shape index: {}]   ;;  %s744_s5 = inlined_call_operand.vmem [shape: f32[8,32], index: 5, kind: input, shape index: {}]   ;;  %s745_s6 = inlined_call_operand.hbm [shape: f32[8,32], index: 6, kind: input, shape index: {}]   ;;  %s746_s7 = inlined_call_operand.vmem [shape: f32[8,32], index: 7, kind: input, shape index: {}]   ;;  %s747_s8 = inlined_call_operand.hbm [shape: f32[1,8,128], index: 8, kind: output, shape index: {}]  }
   0x1   :  { %14 = vsyncpa [#allocation7], 0 }
   0x2   :  { %15 = vsyncpa [#allocation5], 0  ;;  %s603_s27 = smov [#allocation6]   ;;  %s604_s29 = smov [#allocation3]  }
   0x3   :  { %s36_s28 = sshll.u32 %s603_s27, 4  ;;  %s22_s30 = sshll.u32 %s604_s29, 4  ;;  %s37_s28 = int_to_ptr.vmem [resolvable:$true] %s36_s28  ;;  %s23_s30 = int_to_ptr.vmem [resolvable:$true] %s22_s30 }
   0x4   :  { %s509_s11 = scalar_lea.hbm %s742_s3, 16 }
   0x5   :  { %p510_p0 = scmp.ne.s32.totalorder %s742_s3, %s509_s11  ;;  %p513_p1 = scmp.lt.u32.totalorder %s509_s11, %s742_s3 }
   0x7   :  { %p515_p2 = pnand %p513_p1, %p510_p0 }
   0x9   :  { %518 = shalt.err (!%p515_p2)
}
   0xa   :  { %s519_s16 = scalar_lea.vmem %s37_s28, 16  ;;  %s523_s17 = scalar_lea.vmem %s37_s28, 32 }
   0xb   :  { %p520_p3 = scmp.ne.s32.totalorder %s37_s28, %s519_s16  ;;  %p524_p4 = scmp.lt.s32.totalorder %s37_s28, %s37_s28 }
   0xc   :  { %p525_p5 = scmp.lt.s32.totalorder %s523_s17, %s519_s16 }
   0xe   :  { %p526_p6 = por %p525_p5, %p524_p4 }
  0x10   :  { %p527_p7 = pnand %p526_p6, %p520_p3 }
  0x12   :  { %530 = shalt.err (!%p527_p7)
}
  0x13   :  { %39 = dma.hbm_to_vmem [thread:$0]  %s742_s3, 16, %s37_s28, [#allocation7]  }
  0x14   :  { %s531_s22 = scalar_lea.hbm %s739_s0, 16 }
  0x15   :  { %p532_p8 = scmp.ne.s32.totalorder %s739_s0, %s531_s22  ;;  %p535_p9 = scmp.lt.u32.totalorder %s531_s22, %s739_s0 }
  0x17   :  { %p537_p10 = pnand %p535_p9, %p532_p8 }
  0x19   :  { %540 = shalt.err (!%p537_p10)
}
  0x1a   :  { %s541_s27 = scalar_lea.vmem %s23_s30, 16  ;;  %s545_s29 = scalar_lea.vmem %s23_s30, 32 }
  0x1b   :  { %p542_p11 = scmp.ne.s32.totalorder %s23_s30, %s541_s27  ;;  %p546_p12 = scmp.lt.s32.totalorder %s23_s30, %s23_s30 }
  0x1c   :  { %p547_p13 = scmp.lt.s32.totalorder %s545_s29, %s541_s27 }
  0x1e   :  { %p548_p0 = por %p547_p13, %p546_p12 }
  0x20   :  { %p549_p1 = pnand %p548_p0, %p542_p11 }
  0x22   :  { %552 = shalt.err (!%p549_p1)
}
  0x23   :  { %25 = dma.hbm_to_vmem [thread:$0]  %s739_s0, 16, %s23_s30, [#allocation4]  }
  0x24   :  { %s605_s9 = smov [#allocation8]   ;;  %s553_s13 = scalar_lea.hbm %s745_s6, 128 }
  0x25   :  { %s50_s10 = sshll.u32 %s605_s9, 4  ;;  %p554_p2 = scmp.ne.s32.totalorder %s745_s6, %s553_s13  ;;  %s51_s10 = int_to_ptr.vmem [resolvable:$true] %s50_s10 }
  0x26   :  { %p557_p3 = scmp.lt.u32.totalorder %s553_s13, %s745_s6 }
  0x28   :  { %p559_p4 = pnand %p557_p3, %p554_p2 }
  0x2a   :  { %562 = shalt.err (!%p559_p4)
}
  0x2b   :  { %s563_s18 = scalar_lea.vmem %s51_s10, 128  ;;  %p568_p6 = scmp.lt.s32.totalorder %s51_s10, %s51_s10 }
  0x2c   :  { %p564_p5 = scmp.ne.s32.totalorder %s51_s10, %s563_s18  ;;  %p569_p7 = scmp.lt.s32.totalorder %s563_s18, %s563_s18 }
  0x2e   :  { %p570_p8 = por %p569_p7, %p568_p6 }
  0x30   :  { %p571_p9 = pnand %p570_p8, %p564_p5 }
  0x32   :  { %574 = shalt.err (!%p571_p9)
}
  0x33   :  { %53 = dma.hbm_to_vmem [thread:$0]  %s745_s6, 128, %s51_s10, [#allocation7]  }
  0x34   :  { %597 = dma.done.wait [#allocation4], 16  }
  0x35   :  { %598 = vsyncadd [#allocation4], 4294967280 }
  0x36   :  { %599 = dma.done.wait [#allocation7], 144  }
  0x37   :  { %600 = vsyncadd [#allocation7], 4294967152  ;;  %v82_v0 = vld [vmem:[%s743_s4] sm:$0xff]  ;;  %v462_v1 = vld [vmem:[#allocation3] ss:$0 sm:$0xff]  ;;  %vm156_vm0 = vcmask 64512  }
  0x38   :  { %v90_v2 = vsub.f32 %v82_v0, %v462_v1  ;;  %v100_v3 = vld [vmem:[#allocation8] sm:$0xff]  ;;  %v465_v10 = vld [vmem:[#allocation6] ss:$0 sm:$0xff]  ;;  %vm77_vm1 = vcmask 261120   ;;  %v606_v20 = vmov 0.0   ;;  %vm428_vm2 = vcmask 253952  }
  0x39   :  { %v464_v4 = vld [vmem:[%s741_s2] ss:$0 sm:$0xff]  ;;  %79 = vst.msk [vmem:[#allocation2 + $0x8] sm:$0xff] %vm77_vm1, %v606_v20  ;;  %78 = vst.msk [vmem:[#allocation2] sm:$0xff] %vm77_vm1, %v606_v20  ;;  %v424_v45 = vld [vmem:[#allocation3] sm:$0x1] }
  0x3a   :  { %124 = vxpose.xlu0.b32.start.end [1/1] (short) (narrow) %v90_v2, 32  ;;  %v108_v5 = vsub.f32 %v100_v3, %v464_v4  ;;  %v91_v6 = vld [vmem:[%s744_s5] sm:$0xff]  ;;  %80 = vst.msk [vmem:[#allocation2 + $0x10] sm:$0xff] %vm77_vm1, %v606_v20  ;;  %81 = vst.msk [vmem:[#allocation2 + $0x18] sm:$0xff] %vm77_vm1, %v606_v20  ;;  %s607_s28 = smov [#allocation9]  }
  0x3b   :  { %v463_v7 = vld [vmem:[%s740_s1] ss:$0 sm:$0xff]  ;;  %s452_s9 = sshll.u32 %s607_s28, 4  ;;  %s453_s9 = int_to_ptr.vmem [resolvable:$true] %s452_s9 }
  0x3c   :  { %484 = vmatprep.subr.mxu0 %v108_v5  ;;  %v99_v8 = vsub.f32 %v91_v6, %v463_v7  ;;  %v109_v9 = vld [vmem:[%s746_s7] sm:$0xff]  ;;  %s575_s10 = scalar_lea.vmem %s453_s9, 128  ;;  %p580_p11 = scmp.lt.s32.totalorder %s453_s9, %s453_s9 }
  0x3d   :  { %485 = vmatpush3.msra.mxu0 %v108_v5  ;;  %v117_v11 = vsub.f32 %v109_v9, %v465_v10  ;;  %v425_v46 = vld [vmem:[%s740_s1] sm:$0x1]  ;;  %p576_p10 = scmp.ne.s32.totalorder %s453_s9, %s575_s10  ;;  %p581_p12 = scmp.lt.s32.totalorder %s575_s10, %s575_s10 }
  0x3e   :  { %v426_v53 = vsub.f32 %v424_v45, %v425_v46 }
  0x3f   :  { %492 = vmatprep.subr.mxu1 %v117_v11  ;;  %p582_p13 = por %p581_p12, %p580_p11 }
  0x40   :  { %493 = vmatpush3.msra.mxu1 %v117_v11  ;;  %v121_v25 = vld [vmem:[#allocation2 + $0x8] sm:$0xff]  ;;  %v120_v28 = vld [vmem:[#allocation2] sm:$0xff]  ;;  %v427_v58 = vmul.f32 %v426_v53, %v426_v53 }
  0x41   :  { %v123_v33 = vld [vmem:[#allocation2 + $0x18] sm:$0xff]  ;;  %v122_v36 = vld [vmem:[#allocation2 + $0x10] sm:$0xff]  ;;  %p583_p0 = pnand %p582_p13, %p576_p10 }
  0x42   :  { %v429_v60 = vsel %vm428_vm2, %v427_v58, 0.0 }
  0x47   :  { %254 = vxpose.xlu0.b32.start.end [1/1] (short) (narrow) %v99_v8, 32 }
  0xba   :  { %v140_v12 = vpop.trf.xlu0 }
  0xbb   :  { %486 = vmatprep.mubr.msk.f32.mxu0 %vm156_vm0, %v140_v12 }
  0xbe   :  { %v141_v13 = vpop.trf.xlu0 }
  0xbf   :  { %487 = vmatmul.mubr.msk.f32.vlgmr.msra.gmra.mrb[0].mxu0 %vm156_vm0, %v141_v13 }
  0xc2   :  { %v142_v14 = vpop.trf.xlu0 }
  0xc3   :  { %489 = vmatprep.mubr.msk.f32.mxu0 %vm156_vm0, %v142_v14 }
  0xc6   :  { %v143_v15 = vpop.trf.xlu0 }
  0xc7   :  { %490 = vmatmul.mubr.msk.f32.gmra.mrb[2].mxu0 %vm156_vm0, %v143_v15 }
  0xca   :  { %v270_v16 = vpop.trf.xlu0 }
  0xcb   :  { %494 = vmatprep.mubr.msk.f32.mxu1 %vm156_vm0, %v270_v16 }
  0xce   :  { %v271_v17 = vpop.trf.xlu0 }
  0xcf   :  { %495 = vmatmul.mubr.msk.f32.vlgmr.msra.gmra.mrb[0].mxu1 %vm156_vm0, %v271_v17 }
  0xd2   :  { %v272_v18 = vpop.trf.xlu0 }
  0xd3   :  { %497 = vmatprep.mubr.msk.f32.mxu1 %vm156_vm0, %v272_v18 }
  0xd6   :  { %v273_v19 = vpop.trf.xlu0 }
  0xd7   :  { %498 = vmatmul.mubr.msk.f32.gmra.mrb[2].mxu1 %vm156_vm0, %v273_v19 }
 0x192   :  { %v488_v21 = vpop.f32.mrb[0].mxu0 }
 0x193   :  { %v235_v22 = vpop.f32.mrb[1].mxu0 }
 0x19a   :  { %v491_v23 = vpop.f32.mrb[2].mxu0 }
 0x19b   :  { %v245_v24 = vpop.f32.mrb[3].mxu0 }
 0x1a2   :  { %v496_v26 = vpop.f32.mrb[0].mxu1 }
 0x1a3   :  { %v384_v27 = vsub.f32 %v488_v21, %v496_v26  ;;  %v364_v29 = vpop.f32.mrb[1].mxu1 }
 0x1a4   :  { %v383_v30 = vsub.f32 %v235_v22, %v364_v29 }
 0x1a5   :  { %v388_v31 = vadd.f32 %v384_v27, %v121_v25 }
 0x1a6   :  { %v387_v32 = vadd.f32 %v383_v30, %v120_v28 }
 0x1a7   :  { %393 = vst.msk [vmem:[#allocation2 + $0x8] sm:$0xff] %vm77_vm1, %v388_v31 }
 0x1a8   :  { %392 = vst.msk [vmem:[#allocation2] sm:$0xff] %vm77_vm1, %v387_v32 }
 0x1aa   :  { %v499_v34 = vpop.f32.mrb[2].mxu1 }
 0x1ab   :  { %v386_v35 = vsub.f32 %v491_v23, %v499_v34  ;;  %v374_v37 = vpop.f32.mrb[3].mxu1 }
 0x1ac   :  { %v385_v38 = vsub.f32 %v245_v24, %v374_v37 }
 0x1ad   :  { %v390_v39 = vadd.f32 %v386_v35, %v123_v33 }
 0x1ae   :  { %v389_v40 = vadd.f32 %v385_v38, %v122_v36  ;;  %v400_v42 = vld [vmem:[#allocation2 + $0x8] sm:$0xff] }
 0x1af   :  { %395 = vst.msk [vmem:[#allocation2 + $0x18] sm:$0xff] %vm77_vm1, %v390_v39  ;;  %v399_v41 = vld [vmem:[#allocation2] sm:$0xff]  ;;  %v404_v44 = vmul.f32 %v400_v42, %v400_v42 }
 0x1b0   :  { %394 = vst.msk [vmem:[#allocation2 + $0x10] sm:$0xff] %vm77_vm1, %v389_v40  ;;  %v403_v43 = vmul.f32 %v399_v41, %v399_v41 }
 0x1b1   :  { %v408_v49 = vsel %vm77_vm1, %v404_v44, 0.0 }
 0x1b2   :  { %v407_v48 = vsel %vm77_vm1, %v403_v43, 0.0 }
 0x1b3   :  { %v409_v54 = vadd.f32 %v408_v49, %v407_v48 }
 0x1b6   :  { %v402_v47 = vld [vmem:[#allocation2 + $0x18] sm:$0xff] }
 0x1b7   :  { %v401_v50 = vld [vmem:[#allocation2 + $0x10] sm:$0xff]  ;;  %v406_v52 = vmul.f32 %v402_v47, %v402_v47 }
 0x1b8   :  { %v405_v51 = vmul.f32 %v401_v50, %v401_v50 }
 0x1b9   :  { %v412_v57 = vsel %vm77_vm1, %v406_v52, 0.0 }
 0x1ba   :  { %v410_v55 = vsel %vm77_vm1, %v405_v51, 0.0 }
 0x1bb   :  { %v411_v56 = vadd.f32 %v410_v55, %v409_v54 }
 0x1bd   :  { %v413_v59 = vadd.f32 %v412_v57, %v411_v56 }
 0x1bf   :  { %414 = vadd.xlane.f32.xlu1 %v413_v59 }
 0x1c3   :  { %430 = vadd.xlane.f32.xlu1 %v429_v60 }
 0x24c   :  { %v415_v61 = vpop.xlane.xlu1 %414 }
 0x24d   :  { %v416_v62 = vrot.slane %v415_v61, 4 }
 0x24f   :  { %v417_v63 = vadd.f32 %v416_v62, %v415_v61 }
 0x250   :  { %v431_v0 = vpop.xlane.xlu1 %430 }
 0x251   :  { %v418_v1 = vrot.slane %v417_v63, 2  ;;  %v432_v2 = vrot.slane %v431_v0, 4 }
 0x253   :  { %v433_v3 = vadd.f32 %v432_v2, %v431_v0  ;;  %v419_v4 = vadd.f32 %v418_v1, %v417_v63 }
 0x255   :  { %v434_v5 = vrot.slane %v433_v3, 2  ;;  %v420_v6 = vrot.slane %v419_v4, 1 }
 0x257   :  { %v435_v7 = vadd.f32 %v434_v5, %v433_v3  ;;  %v421_v8 = vadd.f32 %v420_v6, %v419_v4 }
 0x259   :  { %500 = vpush %v421_v8  ;;  %v436_v9 = vrot.slane %v435_v7, 1 }
 0x25b   :  { %v437_v10 = vadd.f32 %v436_v9, %v435_v7 }
 0x25d   :  { %502 = vpush %v437_v10 }
 0x28a   :  { %s501_s1 = spop %500 }
 0x28b   :  { %s423_s7 = smul.f32 1.9929847e-05, %s501_s1 }
 0x28e   :  { %s503_s27 = spop %502 }
 0x28f   :  { %s439_s29 = smul.f32 0.03125, %s503_s27 }
 0x291   :  { %s442_s3 = sadd.f32 %s439_s29, %s423_s7 }
 0x293   :  { %v443_v11 = vstv %s442_s3 }
 0x294   :  { %445 = vst [vmem:[#allocation9] sm:$0xff] %v443_v11 }
 0x295   :  { %586 = shalt.err (!%p583_p0)
}
 0x296   :  { %s587_s13 = scalar_lea.hbm %s747_s8, 128 }
 0x297   :  { %p588_p1 = scmp.ne.s32.totalorder %s747_s8, %s587_s13  ;;  %p591_p2 = scmp.lt.u32.totalorder %s587_s13, %s747_s8 }
 0x299   :  { %p593_p3 = pnand %p591_p2, %p588_p1 }
 0x29b   :  { %596 = shalt.err (!%p593_p3)
}
 0x29c   :  { %455 = dma.vmem_to_hbm [thread:$0]  %s453_s9, 128, %s747_s8, [#allocation5]  }
 0x29d   :  { %601 = dma.done.wait [#allocation5], 128  }
 0x29e   :  { %602 = vsyncadd [#allocation5], 4294967168 }
 0x29f   :  { %459 = vsyncpa [#allocation4], 1 }
 0x2a0   :  { %460 = vsyncpa [#allocation7], 1 }
 0x2a1   :  { %461 = vsyncpa [#allocation5], 1 }

</bundles_post_ra>
